<compile_context>
chip_gen: v6e
topology: v6e:2x2x1
jax: 0.10.0
libtpu: 0.0.40
codegen_flags: <defaults>
</compile_context>

<pallas_src>
import functools

import jax
import jax.numpy as jnp
from jax import lax
from jax.experimental import pallas as pl
from jax.experimental.pallas import tpu as pltpu

MAX_COUNT = 8            # labels_count is clamped to 8, as in the torch module
NSEL = MAX_COUNT + 1     # only the top-9 log-probs per row are ever needed

_BLOCK_VMEM_BUDGET = 12 * 1024 * 1024   # target per-block working set (bytes)
_VMEM_LIMIT_BYTES = 40 * 1024 * 1024    # scoped VMEM request (safe on v5e/v6e/v7x)


def _loss_kernel(logits_ref, c_logits_ref, labels_ref, ypred_ref, stats_ref,
                 *, n_rows, n_classes):
    logits = logits_ref[...].astype(jnp.float32)      # (TB, Cp)
    c_logits = c_logits_ref[...].astype(jnp.float32)  # (TB, K)
    labels = labels_ref[...].astype(jnp.float32)      # (TB, Cp)

    TB, Cp = logits.shape
    K = c_logits.shape[1]

    # row-validity mask for the (possibly ragged) last batch block
    row_ids = pl.program_id(0) * TB + lax.broadcasted_iota(jnp.int32, (TB, 1), 0)
    row_valid = (row_ids < n_rows).astype(jnp.float32)             # (TB, 1)

    # ---- log_softmax(logits, dim=1); padded class columns carry a huge negative
    #      fill so they contribute 0 to the sum-exp ----
    m = jnp.max(logits, axis=1, keepdims=True)
    z = logits - m
    lse = jnp.log(jnp.sum(jnp.exp(z), axis=1, keepdims=True))
    log_p_y = z - lse                                              # (TB, Cp)

    # ---- labels_count = min(labels.sum(1) - 1, 8) ----
    lc = jnp.sum(labels, axis=1, keepdims=True) - 1.0
    lc = jnp.minimum(lc, float(MAX_COUNT))
    lc_int = lc.astype(jnp.int32)                                  # (TB, 1)
    # NOTE: a row with zero positive labels gives target -1; torch's
    # CrossEntropyLoss is undefined there.  The one-hot selects nothing so that
    # row contributes logsumexp(c_logits) to loss2 (documented divergence).

    # ---- per-row cross-entropy term of loss2 (row-masked) ----
    cmax = jnp.max(c_logits, axis=1, keepdims=True)
    cz = c_logits - cmax
    clse = jnp.log(jnp.sum(jnp.exp(cz), axis=1, keepdims=True)) + cmax   # (TB, 1)
    kidx = lax.broadcasted_iota(jnp.int32, (TB, K), 1)
    onehot = (kidx == lc_int).astype(jnp.float32)                        # (TB, K)
    picked = jnp.sum(c_logits * onehot, axis=1, keepdims=True)           # (TB, 1)
    loss2_sum = jnp.sum(row_valid * (clse - picked))                     # scalar

    # ---- loss1 numerator: sum(-labels * log_p_y) (padded rows/cols have labels 0)
    loss1_sum = jnp.sum(labels * (-log_p_y))

    # ---- count_pred = argmax(c_logits, dim=1) (first maximal index) ----
    is_max = c_logits >= cmax
    count_pred = jnp.min(jnp.where(is_max, kidx, K), axis=1, keepdims=True)
    kf = count_pred.astype(jnp.float32)                                  # (TB, 1)

    # ---- ranking copy: padded class columns forced to -inf so they never
    #      outrank real classes ----
    if n_classes < Cp:
        class_valid = lax.broadcasted_iota(jnp.int32, (1, Cp), 1) < n_classes
        log_p_rank = jnp.where(class_valid, log_p_y, -jnp.inf)
    else:
        class_valid = None
        log_p_rank = log_p_y

    # ---- x[i] = count_pred[i]-th largest value of log_p_y[i] (descending order,
    #      duplicates counted), via a 9-step threshold-carry max scan.  Only
    #      (TB,1) arrays are carried; the full-width mask is recomputed per step.
    def topk_body(_, carry):
        thr, removed, result = carry
        masked = jnp.where(log_p_rank < thr, log_p_rank, -jnp.inf)       # (TB, Cp)
        vmax = jnp.max(masked, axis=1, keepdims=True)                    # (TB, 1)
        cnt = jnp.sum((masked >= vmax).astype(jnp.float32), axis=1, keepdims=True)
        hit = jnp.logical_and(kf >= removed, kf < removed + cnt)         # (TB, 1)
        result = jnp.where(hit, vmax, result)
        return vmax, removed + cnt, result

    init = (jnp.full((TB, 1), jnp.inf, jnp.float32),
            jnp.zeros((TB, 1), jnp.float32),
            jnp.full((TB, 1), -jnp.inf, jnp.float32))
    _, _, x = lax.fori_loop(0, NSEL, topk_body, init, unroll=True)       # (TB, 1)
    # If count_pred exceeds the number of real classes (only possible when C <= 8),
    # x stays -inf and y_pred becomes all ones, matching torch's sorted indexing.

    # ---- y_pred: 1 where log_p_y >= x else 0 (the two torch.where calls collapse)
    y_pred = (log_p_rank >= x).astype(jnp.float32)                       # (TB, Cp)
    if class_valid is not None:
        y_pred = jnp.where(class_valid, y_pred, 0.0)
    ypred_ref[...] = y_pred.astype(ypred_ref.dtype)

    # ---- per-block per-class stats; batch-axis colsums routed through the MXU ----
    y_stat = y_pred * row_valid
    ones8 = jnp.ones((8, TB), jnp.float32)
    tp = jnp.dot(ones8, y_stat * labels, preferred_element_type=jnp.float32)[0:1]
    col_yp = jnp.dot(ones8, y_stat, preferred_element_type=jnp.float32)[0:1]
    col_lb = jnp.dot(ones8, labels, preferred_element_type=jnp.float32)[0:1]
    fp = col_yp - tp
    fn = col_lb - tp

    stats_ref[0:1, :] = tp
    stats_ref[1:2, :] = fp
    stats_ref[2:3, :] = fn

    # ---- packed per-block scalars in row 3: [loss1_sum, loss2_sum, exact_count]
    mismatch = jnp.sum(jnp.abs(y_pred - labels), axis=1, keepdims=True)  # (TB, 1)
    exact_cnt = jnp.sum(row_valid * (mismatch == 0.0).astype(jnp.float32))

    lane = lax.broadcasted_iota(jnp.int32, (1, Cp), 1)
    packed = jnp.where(lane == 0, loss1_sum, 0.0)
    packed = jnp.where(lane == 1, loss2_sum, packed)
    packed = jnp.where(lane == 2, exact_cnt, packed)
    stats_ref[3:4, :] = packed
    stats_ref[4:8, :] = jnp.zeros((4, Cp), jnp.float32)
    # TODO(synk): c_acc (count-prediction accuracy) is computed but never returned
    # by the original module, so it is intentionally omitted here.


def _round_up(x, n):
    return ((x + n - 1) // n) * n


def _pick_batch_tile(B, Cp, logit_bytes, label_bytes, out_bytes):
    """Largest batch tile whose in-kernel working set fits the per-block VMEM
    budget; sized from C, sublane-aligned, with >= 2 grid blocks when possible."""
    # ~10 live f32 (TB, Cp) temporaries + double-buffered input / y_pred blocks
    per_row = Cp * (10 * 4 + 2 * (logit_bytes + label_bytes) + 2 * out_bytes)
    tb = _BLOCK_VMEM_BUDGET // max(per_row, 1)
    tb = max(8, min(1024, (tb // 8) * 8))
    b8 = _round_up(B, 8)
    tb = min(tb, b8)
    # guarantee nb >= 2 when the batch allows it, so v7x's two TensorCores both
    # get work (harmless on single-TC v5e/v6e)
    if b8 >= 16 and tb > b8 // 2:
        tb = max(8, ((b8 // 2) // 8) * 8)
    return tb


def loss_fn_pallas(logits, c_logits, labels):
    """Pallas equivalent of Loss_fn.forward((logits, c_logits), labels)."""
    B, C = logits.shape
    K = c_logits.shape[1]

    Cp = 128 if C < 128 else C          # lane-dense class width
    out_dtype = logits.dtype            # y_pred emitted in the model dtype

    TB = _pick_batch_tile(B, Cp,
                          jnp.dtype(logits.dtype).itemsize,
                          jnp.dtype(labels.dtype).itemsize,
                          jnp.dtype(out_dtype).itemsize)
    nb = -(-B // TB)                    # cdiv
    B_pad = nb * TB

    pad_b, pad_c = B_pad - B, Cp - C
    if pad_b or pad_c:
        fill = float(jnp.finfo(logits.dtype).min) / 2.0   # huge negative; exp -> 0
        logits_p = jnp.pad(logits, ((0, pad_b), (0, pad_c)), constant_values=fill)
        labels_p = jnp.pad(labels, ((0, pad_b), (0, pad_c)))
        c_logits_p = jnp.pad(c_logits, ((0, pad_b), (0, 0)))
    else:
        logits_p, labels_p, c_logits_p = logits, labels, c_logits

    kernel = functools.partial(_loss_kernel, n_rows=B, n_classes=C)

    y_pred, stats = pl.pallas_call(
        kernel,
        out_shape=(
            jax.ShapeDtypeStruct((B_pad, Cp), out_dtype),       # y_pred
            jax.ShapeDtypeStruct((nb * 8, Cp), jnp.float32),    # per-block stats
        ),
        grid_spec=pltpu.PrefetchScalarGridSpec(
            num_scalar_prefetch=0,
            grid=(nb,),
            in_specs=[
                pl.BlockSpec((TB, Cp), lambda i: (i, 0)),
                pl.BlockSpec((TB, K), lambda i: (i, 0)),
                pl.BlockSpec((TB, Cp), lambda i: (i, 0)),
            ],
            out_specs=(
                pl.BlockSpec((TB, Cp), lambda i: (i, 0)),
                pl.BlockSpec((8, Cp), lambda i: (i, 0)),
            ),
        ),
        compiler_params=pltpu.CompilerParams(
            dimension_semantics=("parallel",),
            vmem_limit_bytes=_VMEM_LIMIT_BYTES),
    )(logits_p, c_logits_p, labels_p)

    # ---- tiny cross-block reductions in plain JAX ----
    stats = stats.reshape(nb, 8, Cp)
    tp = jnp.sum(stats[:, 0, :C], axis=0)
    fp = jnp.sum(stats[:, 1, :C], axis=0)
    fn = jnp.sum(stats[:, 2, :C], axis=0)
    loss1_sum = jnp.sum(stats[:, 3, 0])
    loss2_sum = jnp.sum(stats[:, 3, 1])
    exact = jnp.sum(stats[:, 3, 2])

    loss1 = loss1_sum / jnp.float32(B * C)
    loss2 = loss2_sum / jnp.float32(B)
    loss = loss1 + 0.1 * loss2

    # sklearn-style macro metrics with zero_division=0 semantics
    prec_c = jnp.where(tp + fp > 0.0, tp / jnp.maximum(tp + fp, 1e-12), 0.0)
    rec_c = jnp.where(tp + fn > 0.0, tp / jnp.maximum(tp + fn, 1e-12), 0.0)
    f1_c = jnp.where(2.0 * tp + fp + fn > 0.0,
                     2.0 * tp / jnp.maximum(2.0 * tp + fp + fn, 1e-12), 0.0)
    p = jnp.mean(prec_c)
    r = jnp.mean(rec_c)
    f = jnp.mean(f1_c)
    acc = exact / jnp.float32(B)     # subset (exact-match) accuracy
    return loss, p, r, f, acc, y_pred[:B, :C]


if __name__ == "__main__":
    B, C, K = 20, 16, MAX_COUNT + 1   # batch, multi-label classes, count classes (0..8)

    key = jax.random.PRNGKey(0)
    k1, k2, k3 = jax.random.split(key, 3)

    logits = jax.random.normal(k1, (B, C), dtype=jnp.float32)
    c_logits = jax.random.normal(k2, (B, K), dtype=jnp.float32)

    # deterministic multi-hot labels with at least one positive per row,
    # passed as int8 to keep the HBM read narrow (the kernel casts in VMEM)
    labels_bool = jax.random.uniform(k3, (B, C)) < 0.35
    row_has = jnp.any(labels_bool, axis=1)
    labels_bool = labels_bool.at[:, 0].set(
        jnp.logical_or(labels_bool[:, 0], jnp.logical_not(row_has)))
    labels = labels_bool.astype(jnp.int8)

    loss, p, r, f, acc, y_pred = loss_fn_pallas(logits, c_logits, labels)
    jax.block_until_ready((loss, p, r, f, acc, y_pred))
    print("KERNEL_OK")
</pallas_src>

<mosaic_0001>
module attributes {stable_mosaic.version = 11 : i64} {
  func.func @_loss_kernel(%arg0: i32, %arg1: memref<8x128xf32, #tpu.memory_space<vmem>>, %arg2: memref<8x9xf32, #tpu.memory_space<vmem>>, %arg3: memref<8x128xi8, #tpu.memory_space<vmem>>, %arg4: memref<8x128xf32, #tpu.memory_space<vmem>>, %arg5: memref<8x128xf32, #tpu.memory_space<vmem>>) attributes {dimension_semantics = [#tpu.dimension_semantics<parallel>], iteration_bounds = array<i64: 3>, scalar_prefetch = 0 : i64, scratch_operands = 0 : i64, tpu.core_type = #tpu.core_type<tc>, window_params = [{transform_indices = @transform_0, window_bounds = array<i64: 8, 128>}, {transform_indices = @transform_1, window_bounds = array<i64: 8, 9>}, {transform_indices = @transform_2, window_bounds = array<i64: 8, 128>}, {transform_indices = @transform_3, window_bounds = array<i64: 8, 128>}, {transform_indices = @transform_4, window_bounds = array<i64: 8, 128>}]} {
    %c0 = arith.constant 0 : index
    %c0_0 = arith.constant 0 : index
    %0 = vector.load %arg1[%c0, %c0_0] : memref<8x128xf32, #tpu.memory_space<vmem>>, vector<8x128xf32>
    %c0_1 = arith.constant 0 : index
    %c0_2 = arith.constant 0 : index
    %1 = vector.load %arg2[%c0_1, %c0_2] : memref<8x9xf32, #tpu.memory_space<vmem>>, vector<8x9xf32>
    %c0_3 = arith.constant 0 : index
    %c0_4 = arith.constant 0 : index
    %2 = vector.load %arg3[%c0_3, %c0_4] : memref<8x128xi8, #tpu.memory_space<vmem>>, vector<8x128xi8>
    %3 = arith.sitofp %2 : vector<8x128xi8> to vector<8x128xf32>
    %c8_i32 = arith.constant 8 : i32
    %4 = arith.muli %arg0, %c8_i32 : i32
    %5 = tpu.iota {dimensions = array<i32: 0>} : vector<8x1xi32>
    %6 = vector.broadcast %4 : i32 to vector<8x1xi32>
    %7 = arith.addi %6, %5 : vector<8x1xi32>
    %c20_i32 = arith.constant 20 : i32
    %8 = vector.broadcast %c20_i32 : i32 to vector<8x1xi32>
    %9 = arith.cmpi slt, %7, %8 : vector<8x1xi32>
    %10 = arith.extui %9 : vector<8x1xi1> to vector<8x1xi32>
    %11 = arith.sitofp %10 : vector<8x1xi32> to vector<8x1xf32>
    %cst = arith.constant dense<0xFF800000> : vector<8xf32>
    %12 = vector.multi_reduction <maximumf>, %0, %cst [1] : vector<8x128xf32> to vector<8xf32>
    %13 = vector.shape_cast %12 : vector<8xf32> to vector<8x1xf32>
    %14 = vector.broadcast %13 : vector<8x1xf32> to vector<8x128xf32>
    %15 = arith.subf %0, %14 : vector<8x128xf32>
    %16 = math.exp %15 : vector<8x128xf32>
    %cst_5 = arith.constant dense<0.000000e+00> : vector<8xf32>
    %17 = vector.multi_reduction <add>, %16, %cst_5 [1] : vector<8x128xf32> to vector<8xf32>
    %18 = vector.shape_cast %17 : vector<8xf32> to vector<8x1xf32>
    %19 = math.log %18 : vector<8x1xf32>
    %20 = vector.broadcast %19 : vector<8x1xf32> to vector<8x128xf32>
    %21 = arith.subf %15, %20 : vector<8x128xf32>
    %cst_6 = arith.constant dense<0.000000e+00> : vector<8xf32>
    %22 = vector.multi_reduction <add>, %3, %cst_6 [1] : vector<8x128xf32> to vector<8xf32>
    %23 = vector.shape_cast %22 : vector<8xf32> to vector<8x1xf32>
    %cst_7 = arith.constant 1.000000e+00 : f32
    %24 = vector.broadcast %cst_7 : f32 to vector<8x1xf32>
    %25 = arith.subf %23, %24 : vector<8x1xf32>
    %cst_8 = arith.constant 8.000000e+00 : f32
    %26 = vector.broadcast %cst_8 : f32 to vector<8x1xf32>
    %27 = arith.minimumf %25, %26 : vector<8x1xf32>
    %28 = arith.fptosi %27 : vector<8x1xf32> to vector<8x1xi32>
    %cst_9 = arith.constant dense<0xFF800000> : vector<8xf32>
    %29 = vector.multi_reduction <maximumf>, %1, %cst_9 [1] : vector<8x9xf32> to vector<8xf32>
    %30 = vector.shape_cast %29 : vector<8xf32> to vector<8x1xf32>
    %31 = vector.broadcast %30 : vector<8x1xf32> to vector<8x9xf32>
    %32 = arith.subf %1, %31 : vector<8x9xf32>
    %33 = math.exp %32 : vector<8x9xf32>
    %cst_10 = arith.constant dense<0.000000e+00> : vector<8xf32>
    %34 = vector.multi_reduction <add>, %33, %cst_10 [1] : vector<8x9xf32> to vector<8xf32>
    %35 = vector.shape_cast %34 : vector<8xf32> to vector<8x1xf32>
    %36 = math.log %35 : vector<8x1xf32>
    %37 = arith.addf %36, %30 : vector<8x1xf32>
    %38 = tpu.iota {dimensions = array<i32: 1>} : vector<8x9xi32>
    %39 = vector.broadcast %28 : vector<8x1xi32> to vector<8x9xi32>
    %40 = arith.cmpi eq, %38, %39 : vector<8x9xi32>
    %41 = arith.extui %40 : vector<8x9xi1> to vector<8x9xi32>
    %42 = arith.sitofp %41 : vector<8x9xi32> to vector<8x9xf32>
    %43 = arith.mulf %1, %42 : vector<8x9xf32>
    %cst_11 = arith.constant dense<0.000000e+00> : vector<8xf32>
    %44 = vector.multi_reduction <add>, %43, %cst_11 [1] : vector<8x9xf32> to vector<8xf32>
    %45 = vector.shape_cast %44 : vector<8xf32> to vector<8x1xf32>
    %46 = arith.subf %37, %45 : vector<8x1xf32>
    %47 = arith.mulf %11, %46 : vector<8x1xf32>
    %48 = vector.shape_cast %47 : vector<8x1xf32> to vector<1x8x1xf32>
    %cst_12 = arith.constant dense<0.000000e+00> : vector<1xf32>
    %49 = vector.multi_reduction <add>, %48, %cst_12 [1, 2] : vector<1x8x1xf32> to vector<1xf32>
    %50 = vector.shape_cast %49 : vector<1xf32> to vector<1x1x1xf32>
    %51 = vector.extract %50[0, 0, 0] : f32 from vector<1x1x1xf32>
    %cst_13 = arith.constant 0.000000e+00 : f32
    %52 = vector.broadcast %cst_13 : f32 to vector<8x128xf32>
    %53 = arith.subf %52, %21 : vector<8x128xf32>
    %54 = arith.mulf %3, %53 : vector<8x128xf32>
    %55 = vector.shape_cast %54 : vector<8x128xf32> to vector<1x8x128xf32>
    %cst_14 = arith.constant dense<0.000000e+00> : vector<1xf32>
    %56 = vector.multi_reduction <add>, %55, %cst_14 [1, 2] : vector<1x8x128xf32> to vector<1xf32>
    %57 = vector.shape_cast %56 : vector<1xf32> to vector<1x1x1xf32>
    %58 = vector.extract %57[0, 0, 0] : f32 from vector<1x1x1xf32>
    %59 = vector.broadcast %30 : vector<8x1xf32> to vector<8x9xf32>
    %60 = arith.cmpf oge, %1, %59 : vector<8x9xf32>
    %c9_i32 = arith.constant 9 : i32
    %61 = vector.broadcast %c9_i32 : i32 to vector<8x9xi32>
    %62 = arith.select %60, %38, %61 : vector<8x9xi1>, vector<8x9xi32>
    %cst_15 = arith.constant dense<2147483647> : vector<8xi32>
    %63 = vector.multi_reduction <minsi>, %62, %cst_15 [1] : vector<8x9xi32> to vector<8xi32>
    %64 = vector.shape_cast %63 : vector<8xi32> to vector<8x1xi32>
    %65 = arith.sitofp %64 : vector<8x1xi32> to vector<8x1xf32>
    %66 = tpu.iota {dimensions = array<i32: 1>} : vector<1x128xi32>
    %c16_i32 = arith.constant 16 : i32
    %67 = vector.broadcast %c16_i32 : i32 to vector<1x128xi32>
    %68 = arith.cmpi slt, %66, %67 : vector<1x128xi32>
    %cst_16 = arith.constant 0xFF800000 : f32
    %69 = vector.shape_cast %68 : vector<1x128xi1> to vector<1x128xi1>
    %70 = vector.broadcast %69 : vector<1x128xi1> to vector<8x128xi1>
    %71 = vector.broadcast %cst_16 : f32 to vector<8x128xf32>
    %72 = arith.select %70, %21, %71 : vector<8x128xi1>, vector<8x128xf32>
    %cst_17 = arith.constant 0x7F800000 : f32
    %73 = vector.broadcast %cst_17 : f32 to vector<8x1xf32>
    %cst_18 = arith.constant 0.000000e+00 : f32
    %74 = vector.broadcast %cst_18 : f32 to vector<8x1xf32>
    %cst_19 = arith.constant 0xFF800000 : f32
    %75 = vector.broadcast %cst_19 : f32 to vector<8x1xf32>
    %c0_i32 = arith.constant 0 : i32
    %76 = vector.broadcast %73 : vector<8x1xf32> to vector<8x128xf32>
    %77 = arith.cmpf olt, %72, %76 : vector<8x128xf32>
    %cst_20 = arith.constant 0xFF800000 : f32
    %78 = vector.broadcast %cst_20 : f32 to vector<8x128xf32>
    %79 = arith.select %77, %72, %78 : vector<8x128xi1>, vector<8x128xf32>
    %cst_21 = arith.constant dense<0xFF800000> : vector<8xf32>
    %80 = vector.multi_reduction <maximumf>, %79, %cst_21 [1] : vector<8x128xf32> to vector<8xf32>
    %81 = vector.shape_cast %80 : vector<8xf32> to vector<8x1xf32>
    %82 = vector.broadcast %81 : vector<8x1xf32> to vector<8x128xf32>
    %83 = arith.cmpf oge, %79, %82 : vector<8x128xf32>
    %84 = arith.extui %83 : vector<8x128xi1> to vector<8x128xi32>
    %85 = arith.sitofp %84 : vector<8x128xi32> to vector<8x128xf32>
    %cst_22 = arith.constant dense<0.000000e+00> : vector<8xf32>
    %86 = vector.multi_reduction <add>, %85, %cst_22 [1] : vector<8x128xf32> to vector<8xf32>
    %87 = vector.shape_cast %86 : vector<8xf32> to vector<8x1xf32>
    %88 = arith.cmpf oge, %65, %74 : vector<8x1xf32>
    %89 = arith.addf %74, %87 : vector<8x1xf32>
    %90 = arith.cmpf olt, %65, %89 : vector<8x1xf32>
    %91 = arith.andi %88, %90 : vector<8x1xi1>
    %92 = arith.select %91, %81, %75 : vector<8x1xi1>, vector<8x1xf32>
    %93 = arith.addf %74, %87 : vector<8x1xf32>
    %c1_i32 = arith.constant 1 : i32
    %94 = vector.broadcast %81 : vector<8x1xf32> to vector<8x128xf32>
    %95 = arith.cmpf olt, %72, %94 : vector<8x128xf32>
    %cst_23 = arith.constant 0xFF800000 : f32
    %96 = vector.broadcast %cst_23 : f32 to vector<8x128xf32>
    %97 = arith.select %95, %72, %96 : vector<8x128xi1>, vector<8x128xf32>
    %cst_24 = arith.constant dense<0xFF800000> : vector<8xf32>
    %98 = vector.multi_reduction <maximumf>, %97, %cst_24 [1] : vector<8x128xf32> to vector<8xf32>
    %99 = vector.shape_cast %98 : vector<8xf32> to vector<8x1xf32>
    %100 = vector.broadcast %99 : vector<8x1xf32> to vector<8x128xf32>
    %101 = arith.cmpf oge, %97, %100 : vector<8x128xf32>
    %102 = arith.extui %101 : vector<8x128xi1> to vector<8x128xi32>
    %103 = arith.sitofp %102 : vector<8x128xi32> to vector<8x128xf32>
    %cst_25 = arith.constant dense<0.000000e+00> : vector<8xf32>
    %104 = vector.multi_reduction <add>, %103, %cst_25 [1] : vector<8x128xf32> to vector<8xf32>
    %105 = vector.shape_cast %104 : vector<8xf32> to vector<8x1xf32>
    %106 = arith.cmpf oge, %65, %93 : vector<8x1xf32>
    %107 = arith.addf %93, %105 : vector<8x1xf32>
    %108 = arith.cmpf olt, %65, %107 : vector<8x1xf32>
    %109 = arith.andi %106, %108 : vector<8x1xi1>
    %110 = arith.select %109, %99, %92 : vector<8x1xi1>, vector<8x1xf32>
    %111 = arith.addf %93, %105 : vector<8x1xf32>
    %c2_i32 = arith.constant 2 : i32
    %112 = vector.broadcast %99 : vector<8x1xf32> to vector<8x128xf32>
    %113 = arith.cmpf olt, %72, %112 : vector<8x128xf32>
    %cst_26 = arith.constant 0xFF800000 : f32
    %114 = vector.broadcast %cst_26 : f32 to vector<8x128xf32>
    %115 = arith.select %113, %72, %114 : vector<8x128xi1>, vector<8x128xf32>
    %cst_27 = arith.constant dense<0xFF800000> : vector<8xf32>
    %116 = vector.multi_reduction <maximumf>, %115, %cst_27 [1] : vector<8x128xf32> to vector<8xf32>
    %117 = vector.shape_cast %116 : vector<8xf32> to vector<8x1xf32>
    %118 = vector.broadcast %117 : vector<8x1xf32> to vector<8x128xf32>
    %119 = arith.cmpf oge, %115, %118 : vector<8x128xf32>
    %120 = arith.extui %119 : vector<8x128xi1> to vector<8x128xi32>
    %121 = arith.sitofp %120 : vector<8x128xi32> to vector<8x128xf32>
    %cst_28 = arith.constant dense<0.000000e+00> : vector<8xf32>
    %122 = vector.multi_reduction <add>, %121, %cst_28 [1] : vector<8x128xf32> to vector<8xf32>
    %123 = vector.shape_cast %122 : vector<8xf32> to vector<8x1xf32>
    %124 = arith.cmpf oge, %65, %111 : vector<8x1xf32>
    %125 = arith.addf %111, %123 : vector<8x1xf32>
    %126 = arith.cmpf olt, %65, %125 : vector<8x1xf32>
    %127 = arith.andi %124, %126 : vector<8x1xi1>
    %128 = arith.select %127, %117, %110 : vector<8x1xi1>, vector<8x1xf32>
    %129 = arith.addf %111, %123 : vector<8x1xf32>
    %c3_i32 = arith.constant 3 : i32
    %130 = vector.broadcast %117 : vector<8x1xf32> to vector<8x128xf32>
    %131 = arith.cmpf olt, %72, %130 : vector<8x128xf32>
    %cst_29 = arith.constant 0xFF800000 : f32
    %132 = vector.broadcast %cst_29 : f32 to vector<8x128xf32>
    %133 = arith.select %131, %72, %132 : vector<8x128xi1>, vector<8x128xf32>
    %cst_30 = arith.constant dense<0xFF800000> : vector<8xf32>
    %134 = vector.multi_reduction <maximumf>, %133, %cst_30 [1] : vector<8x128xf32> to vector<8xf32>
    %135 = vector.shape_cast %134 : vector<8xf32> to vector<8x1xf32>
    %136 = vector.broadcast %135 : vector<8x1xf32> to vector<8x128xf32>
    %137 = arith.cmpf oge, %133, %136 : vector<8x128xf32>
    %138 = arith.extui %137 : vector<8x128xi1> to vector<8x128xi32>
    %139 = arith.sitofp %138 : vector<8x128xi32> to vector<8x128xf32>
    %cst_31 = arith.constant dense<0.000000e+00> : vector<8xf32>
    %140 = vector.multi_reduction <add>, %139, %cst_31 [1] : vector<8x128xf32> to vector<8xf32>
    %141 = vector.shape_cast %140 : vector<8xf32> to vector<8x1xf32>
    %142 = arith.cmpf oge, %65, %129 : vector<8x1xf32>
    %143 = arith.addf %129, %141 : vector<8x1xf32>
    %144 = arith.cmpf olt, %65, %143 : vector<8x1xf32>
    %145 = arith.andi %142, %144 : vector<8x1xi1>
    %146 = arith.select %145, %135, %128 : vector<8x1xi1>, vector<8x1xf32>
    %147 = arith.addf %129, %141 : vector<8x1xf32>
    %c4_i32 = arith.constant 4 : i32
    %148 = vector.broadcast %135 : vector<8x1xf32> to vector<8x128xf32>
    %149 = arith.cmpf olt, %72, %148 : vector<8x128xf32>
    %cst_32 = arith.constant 0xFF800000 : f32
    %150 = vector.broadcast %cst_32 : f32 to vector<8x128xf32>
    %151 = arith.select %149, %72, %150 : vector<8x128xi1>, vector<8x128xf32>
    %cst_33 = arith.constant dense<0xFF800000> : vector<8xf32>
    %152 = vector.multi_reduction <maximumf>, %151, %cst_33 [1] : vector<8x128xf32> to vector<8xf32>
    %153 = vector.shape_cast %152 : vector<8xf32> to vector<8x1xf32>
    %154 = vector.broadcast %153 : vector<8x1xf32> to vector<8x128xf32>
    %155 = arith.cmpf oge, %151, %154 : vector<8x128xf32>
    %156 = arith.extui %155 : vector<8x128xi1> to vector<8x128xi32>
    %157 = arith.sitofp %156 : vector<8x128xi32> to vector<8x128xf32>
    %cst_34 = arith.constant dense<0.000000e+00> : vector<8xf32>
    %158 = vector.multi_reduction <add>, %157, %cst_34 [1] : vector<8x128xf32> to vector<8xf32>
    %159 = vector.shape_cast %158 : vector<8xf32> to vector<8x1xf32>
    %160 = arith.cmpf oge, %65, %147 : vector<8x1xf32>
    %161 = arith.addf %147, %159 : vector<8x1xf32>
    %162 = arith.cmpf olt, %65, %161 : vector<8x1xf32>
    %163 = arith.andi %160, %162 : vector<8x1xi1>
    %164 = arith.select %163, %153, %146 : vector<8x1xi1>, vector<8x1xf32>
    %165 = arith.addf %147, %159 : vector<8x1xf32>
    %c5_i32 = arith.constant 5 : i32
    %166 = vector.broadcast %153 : vector<8x1xf32> to vector<8x128xf32>
    %167 = arith.cmpf olt, %72, %166 : vector<8x128xf32>
    %cst_35 = arith.constant 0xFF800000 : f32
    %168 = vector.broadcast %cst_35 : f32 to vector<8x128xf32>
    %169 = arith.select %167, %72, %168 : vector<8x128xi1>, vector<8x128xf32>
    %cst_36 = arith.constant dense<0xFF800000> : vector<8xf32>
    %170 = vector.multi_reduction <maximumf>, %169, %cst_36 [1] : vector<8x128xf32> to vector<8xf32>
    %171 = vector.shape_cast %170 : vector<8xf32> to vector<8x1xf32>
    %172 = vector.broadcast %171 : vector<8x1xf32> to vector<8x128xf32>
    %173 = arith.cmpf oge, %169, %172 : vector<8x128xf32>
    %174 = arith.extui %173 : vector<8x128xi1> to vector<8x128xi32>
    %175 = arith.sitofp %174 : vector<8x128xi32> to vector<8x128xf32>
    %cst_37 = arith.constant dense<0.000000e+00> : vector<8xf32>
    %176 = vector.multi_reduction <add>, %175, %cst_37 [1] : vector<8x128xf32> to vector<8xf32>
    %177 = vector.shape_cast %176 : vector<8xf32> to vector<8x1xf32>
    %178 = arith.cmpf oge, %65, %165 : vector<8x1xf32>
    %179 = arith.addf %165, %177 : vector<8x1xf32>
    %180 = arith.cmpf olt, %65, %179 : vector<8x1xf32>
    %181 = arith.andi %178, %180 : vector<8x1xi1>
    %182 = arith.select %181, %171, %164 : vector<8x1xi1>, vector<8x1xf32>
    %183 = arith.addf %165, %177 : vector<8x1xf32>
    %c6_i32 = arith.constant 6 : i32
    %184 = vector.broadcast %171 : vector<8x1xf32> to vector<8x128xf32>
    %185 = arith.cmpf olt, %72, %184 : vector<8x128xf32>
    %cst_38 = arith.constant 0xFF800000 : f32
    %186 = vector.broadcast %cst_38 : f32 to vector<8x128xf32>
    %187 = arith.select %185, %72, %186 : vector<8x128xi1>, vector<8x128xf32>
    %cst_39 = arith.constant dense<0xFF800000> : vector<8xf32>
    %188 = vector.multi_reduction <maximumf>, %187, %cst_39 [1] : vector<8x128xf32> to vector<8xf32>
    %189 = vector.shape_cast %188 : vector<8xf32> to vector<8x1xf32>
    %190 = vector.broadcast %189 : vector<8x1xf32> to vector<8x128xf32>
    %191 = arith.cmpf oge, %187, %190 : vector<8x128xf32>
    %192 = arith.extui %191 : vector<8x128xi1> to vector<8x128xi32>
    %193 = arith.sitofp %192 : vector<8x128xi32> to vector<8x128xf32>
    %cst_40 = arith.constant dense<0.000000e+00> : vector<8xf32>
    %194 = vector.multi_reduction <add>, %193, %cst_40 [1] : vector<8x128xf32> to vector<8xf32>
    %195 = vector.shape_cast %194 : vector<8xf32> to vector<8x1xf32>
    %196 = arith.cmpf oge, %65, %183 : vector<8x1xf32>
    %197 = arith.addf %183, %195 : vector<8x1xf32>
    %198 = arith.cmpf olt, %65, %197 : vector<8x1xf32>
    %199 = arith.andi %196, %198 : vector<8x1xi1>
    %200 = arith.select %199, %189, %182 : vector<8x1xi1>, vector<8x1xf32>
    %201 = arith.addf %183, %195 : vector<8x1xf32>
    %c7_i32 = arith.constant 7 : i32
    %202 = vector.broadcast %189 : vector<8x1xf32> to vector<8x128xf32>
    %203 = arith.cmpf olt, %72, %202 : vector<8x128xf32>
    %cst_41 = arith.constant 0xFF800000 : f32
    %204 = vector.broadcast %cst_41 : f32 to vector<8x128xf32>
    %205 = arith.select %203, %72, %204 : vector<8x128xi1>, vector<8x128xf32>
    %cst_42 = arith.constant dense<0xFF800000> : vector<8xf32>
    %206 = vector.multi_reduction <maximumf>, %205, %cst_42 [1] : vector<8x128xf32> to vector<8xf32>
    %207 = vector.shape_cast %206 : vector<8xf32> to vector<8x1xf32>
    %208 = vector.broadcast %207 : vector<8x1xf32> to vector<8x128xf32>
    %209 = arith.cmpf oge, %205, %208 : vector<8x128xf32>
    %210 = arith.extui %209 : vector<8x128xi1> to vector<8x128xi32>
    %211 = arith.sitofp %210 : vector<8x128xi32> to vector<8x128xf32>
    %cst_43 = arith.constant dense<0.000000e+00> : vector<8xf32>
    %212 = vector.multi_reduction <add>, %211, %cst_43 [1] : vector<8x128xf32> to vector<8xf32>
    %213 = vector.shape_cast %212 : vector<8xf32> to vector<8x1xf32>
    %214 = arith.cmpf oge, %65, %201 : vector<8x1xf32>
    %215 = arith.addf %201, %213 : vector<8x1xf32>
    %216 = arith.cmpf olt, %65, %215 : vector<8x1xf32>
    %217 = arith.andi %214, %216 : vector<8x1xi1>
    %218 = arith.select %217, %207, %200 : vector<8x1xi1>, vector<8x1xf32>
    %219 = arith.addf %201, %213 : vector<8x1xf32>
    %c8_i32_44 = arith.constant 8 : i32
    %220 = vector.broadcast %207 : vector<8x1xf32> to vector<8x128xf32>
    %221 = arith.cmpf olt, %72, %220 : vector<8x128xf32>
    %cst_45 = arith.constant 0xFF800000 : f32
    %222 = vector.broadcast %cst_45 : f32 to vector<8x128xf32>
    %223 = arith.select %221, %72, %222 : vector<8x128xi1>, vector<8x128xf32>
    %cst_46 = arith.constant dense<0xFF800000> : vector<8xf32>
    %224 = vector.multi_reduction <maximumf>, %223, %cst_46 [1] : vector<8x128xf32> to vector<8xf32>
    %225 = vector.shape_cast %224 : vector<8xf32> to vector<8x1xf32>
    %226 = vector.broadcast %225 : vector<8x1xf32> to vector<8x128xf32>
    %227 = arith.cmpf oge, %223, %226 : vector<8x128xf32>
    %228 = arith.extui %227 : vector<8x128xi1> to vector<8x128xi32>
    %229 = arith.sitofp %228 : vector<8x128xi32> to vector<8x128xf32>
    %cst_47 = arith.constant dense<0.000000e+00> : vector<8xf32>
    %230 = vector.multi_reduction <add>, %229, %cst_47 [1] : vector<8x128xf32> to vector<8xf32>
    %231 = vector.shape_cast %230 : vector<8xf32> to vector<8x1xf32>
    %232 = arith.cmpf oge, %65, %219 : vector<8x1xf32>
    %233 = arith.addf %219, %231 : vector<8x1xf32>
    %234 = arith.cmpf olt, %65, %233 : vector<8x1xf32>
    %235 = arith.andi %232, %234 : vector<8x1xi1>
    %236 = arith.select %235, %225, %218 : vector<8x1xi1>, vector<8x1xf32>
    %237 = arith.addf %219, %231 : vector<8x1xf32>
    %238 = vector.broadcast %236 : vector<8x1xf32> to vector<8x128xf32>
    %239 = arith.cmpf oge, %72, %238 : vector<8x128xf32>
    %240 = arith.extui %239 : vector<8x128xi1> to vector<8x128xi32>
    %241 = arith.sitofp %240 : vector<8x128xi32> to vector<8x128xf32>
    %cst_48 = arith.constant 0.000000e+00 : f32
    %242 = vector.shape_cast %68 : vector<1x128xi1> to vector<1x128xi1>
    %243 = vector.broadcast %242 : vector<1x128xi1> to vector<8x128xi1>
    %244 = vector.broadcast %cst_48 : f32 to vector<8x128xf32>
    %245 = arith.select %243, %241, %244 : vector<8x128xi1>, vector<8x128xf32>
    %c0_49 = arith.constant 0 : index
    %c0_50 = arith.constant 0 : index
    %246 = vector.load %arg4[%c0_49, %c0_50] : memref<8x128xf32, #tpu.memory_space<vmem>>, vector<8x128xf32>
    tpu.vector_store %arg4[%c0_49, %c0_50], %245 {strides = array<i32>} : memref<8x128xf32, #tpu.memory_space<vmem>>, vector<8x128xf32>,
    %247 = vector.broadcast %11 : vector<8x1xf32> to vector<8x128xf32>
    %248 = arith.mulf %245, %247 : vector<8x128xf32>
    %cst_51 = arith.constant 1.000000e+00 : f32
    %249 = vector.broadcast %cst_51 : f32 to vector<8x8xf32>
    %250 = arith.mulf %248, %3 : vector<8x128xf32>
    %cst_52 = arith.constant dense<0.000000e+00> : vector<8x128xf32>
    %251 = tpu.matmul %249, %250, %cst_52 {dimension_numbers = #tpu.dot_dimension_numbers<[1], [0], [0], [1], [0, 0, 1, 1], [], []>} : vector<8x8xf32>, vector<8x128xf32>, vector<8x128xf32> -> vector<8x128xf32>
    %252 = vector.extract_strided_slice %251 {offsets = [0, 0], sizes = [1, 128], strides = [1, 1]} : vector<8x128xf32> to vector<1x128xf32>
    %cst_53 = arith.constant dense<0.000000e+00> : vector<8x128xf32>
    %253 = tpu.matmul %249, %248, %cst_53 {dimension_numbers = #tpu.dot_dimension_numbers<[1], [0], [0], [1], [0, 0, 1, 1], [], []>} : vector<8x8xf32>, vector<8x128xf32>, vector<8x128xf32> -> vector<8x128xf32>
    %254 = vector.extract_strided_slice %253 {offsets = [0, 0], sizes = [1, 128], strides = [1, 1]} : vector<8x128xf32> to vector<1x128xf32>
    %cst_54 = arith.constant dense<0.000000e+00> : vector<8x128xf32>
    %255 = tpu.matmul %249, %3, %cst_54 {dimension_numbers = #tpu.dot_dimension_numbers<[1], [0], [0], [1], [0, 0, 1, 1], [], []>} : vector<8x8xf32>, vector<8x128xf32>, vector<8x128xf32> -> vector<8x128xf32>
    %256 = vector.extract_strided_slice %255 {offsets = [0, 0], sizes = [1, 128], strides = [1, 1]} : vector<8x128xf32> to vector<1x128xf32>
    %257 = arith.subf %254, %252 : vector<1x128xf32>
    %258 = arith.subf %256, %252 : vector<1x128xf32>
    %c0_55 = arith.constant 0 : index
    %c0_56 = arith.constant 0 : index
    %259 = vector.load %arg5[%c0_55, %c0_56] : memref<8x128xf32, #tpu.memory_space<vmem>>, vector<1x128xf32>
    tpu.vector_store %arg5[%c0_55, %c0_56], %252 {strides = array<i32>} : memref<8x128xf32, #tpu.memory_space<vmem>>, vector<1x128xf32>,
    %c1 = arith.constant 1 : index
    %c0_57 = arith.constant 0 : index
    %260 = vector.load %arg5[%c1, %c0_57] : memref<8x128xf32, #tpu.memory_space<vmem>>, vector<1x128xf32>
    tpu.vector_store %arg5[%c1, %c0_57], %257 {strides = array<i32>} : memref<8x128xf32, #tpu.memory_space<vmem>>, vector<1x128xf32>,
    %c2 = arith.constant 2 : index
    %c0_58 = arith.constant 0 : index
    %261 = vector.load %arg5[%c2, %c0_58] : memref<8x128xf32, #tpu.memory_space<vmem>>, vector<1x128xf32>
    tpu.vector_store %arg5[%c2, %c0_58], %258 {strides = array<i32>} : memref<8x128xf32, #tpu.memory_space<vmem>>, vector<1x128xf32>,
    %262 = arith.subf %245, %3 : vector<8x128xf32>
    %263 = math.absf %262 : vector<8x128xf32>
    %cst_59 = arith.constant dense<0.000000e+00> : vector<8xf32>
    %264 = vector.multi_reduction <add>, %263, %cst_59 [1] : vector<8x128xf32> to vector<8xf32>
    %265 = vector.shape_cast %264 : vector<8xf32> to vector<8x1xf32>
    %cst_60 = arith.constant 0.000000e+00 : f32
    %266 = vector.broadcast %cst_60 : f32 to vector<8x1xf32>
    %267 = arith.cmpf oeq, %265, %266 : vector<8x1xf32>
    %268 = arith.extui %267 : vector<8x1xi1> to vector<8x1xi32>
    %269 = arith.sitofp %268 : vector<8x1xi32> to vector<8x1xf32>
    %270 = arith.mulf %11, %269 : vector<8x1xf32>
    %271 = vector.shape_cast %270 : vector<8x1xf32> to vector<1x8x1xf32>
    %cst_61 = arith.constant dense<0.000000e+00> : vector<1xf32>
    %272 = vector.multi_reduction <add>, %271, %cst_61 [1, 2] : vector<1x8x1xf32> to vector<1xf32>
    %273 = vector.shape_cast %272 : vector<1xf32> to vector<1x1x1xf32>
    %274 = vector.extract %273[0, 0, 0] : f32 from vector<1x1x1xf32>
    %275 = tpu.iota {dimensions = array<i32: 1>} : vector<1x128xi32>
    %c0_i32_62 = arith.constant 0 : i32
    %276 = vector.broadcast %c0_i32_62 : i32 to vector<1x128xi32>
    %277 = arith.cmpi eq, %275, %276 : vector<1x128xi32>
    %cst_63 = arith.constant 0.000000e+00 : f32
    %278 = vector.broadcast %58 : f32 to vector<1x128xf32>
    %279 = vector.broadcast %cst_63 : f32 to vector<1x128xf32>
    %280 = arith.select %277, %278, %279 : vector<1x128xi1>, vector<1x128xf32>
    %c1_i32_64 = arith.constant 1 : i32
    %281 = vector.broadcast %c1_i32_64 : i32 to vector<1x128xi32>
    %282 = arith.cmpi eq, %275, %281 : vector<1x128xi32>
    %283 = vector.broadcast %51 : f32 to vector<1x128xf32>
    %284 = arith.select %282, %283, %280 : vector<1x128xi1>, vector<1x128xf32>
    %c2_i32_65 = arith.constant 2 : i32
    %285 = vector.broadcast %c2_i32_65 : i32 to vector<1x128xi32>
    %286 = arith.cmpi eq, %275, %285 : vector<1x128xi32>
    %287 = vector.broadcast %274 : f32 to vector<1x128xf32>
    %288 = arith.select %286, %287, %284 : vector<1x128xi1>, vector<1x128xf32>
    %c3 = arith.constant 3 : index
    %c0_66 = arith.constant 0 : index
    %289 = vector.load %arg5[%c3, %c0_66] : memref<8x128xf32, #tpu.memory_space<vmem>>, vector<1x128xf32>
    tpu.vector_store %arg5[%c3, %c0_66], %288 {strides = array<i32>} : memref<8x128xf32, #tpu.memory_space<vmem>>, vector<1x128xf32>,
    %cst_67 = arith.constant 0.000000e+00 : f32
    %290 = vector.broadcast %cst_67 : f32 to vector<4x128xf32>
    %c4 = arith.constant 4 : index
    %c0_68 = arith.constant 0 : index
    %291 = vector.load %arg5[%c4, %c0_68] : memref<8x128xf32, #tpu.memory_space<vmem>>, vector<4x128xf32>
    tpu.vector_store %arg5[%c4, %c0_68], %290 {strides = array<i32>} : memref<8x128xf32, #tpu.memory_space<vmem>>, vector<4x128xf32>,
    return
  }
  func.func @transform_0(%arg0: i32) -> (i32, i32) {
    %c0_i32 = arith.constant 0 : i32
    %c0_i32_0 = arith.constant 0 : i32
    return %arg0, %c0_i32 : i32, i32
  }
  func.func @transform_1(%arg0: i32) -> (i32, i32) {
    %c0_i32 = arith.constant 0 : i32
    %c0_i32_0 = arith.constant 0 : i32
    return %arg0, %c0_i32 : i32, i32
  }
  func.func @transform_2(%arg0: i32) -> (i32, i32) {
    %c0_i32 = arith.constant 0 : i32
    %c0_i32_0 = arith.constant 0 : i32
    return %arg0, %c0_i32 : i32, i32
  }
  func.func @transform_3(%arg0: i32) -> (i32, i32) {
    %c0_i32 = arith.constant 0 : i32
    %c0_i32_0 = arith.constant 0 : i32
    return %arg0, %c0_i32 : i32, i32
  }
  func.func @transform_4(%arg0: i32) -> (i32, i32) {
    %c0_i32 = arith.constant 0 : i32
    %c0_i32_0 = arith.constant 0 : i32
    return %arg0, %c0_i32 : i32, i32
  }
}

</mosaic_0001>

<bundles_post_ra>
// kernel: tpu_custom_call.1
= control target key start
LH: loop header
LB: loop body
LE: loop exit
PB: predicated region body
PF: predicated region fallthrough
CT: control target
= control target key end

     0   :  { %10 = vsyncpa [#allocation3], 0  ;;  %s1388_s0 = inlined_call_operand.vmem [shape: f32[24,128], index: 0, kind: input, shape index: {}]   ;;  %s1389_s1 = inlined_call_operand.vmem [shape: f32[24,9], index: 1, kind: input, shape index: {}]   ;;  %s1390_s2 = inlined_call_operand.vmem [shape: s8[24,128], index: 2, kind: input, shape index: {}]   ;;  %s1391_s3 = inlined_call_operand.hbm [shape: f32[24,128], index: 3, kind: output, shape index: {0}]   ;;  %s1392_s4 = inlined_call_operand.hbm [shape: f32[24,128], index: 4, kind: output, shape index: {1}]  }
   0x1   :  { %12 = vsyncpa [#allocation3 + $0x1], 0 }
   0x2   :  { %13 = vsyncpa [#allocation5], 0 }
   0x3   :  { %15 = vsyncpa [#allocation5 + $0x1], 0  ;;  %s1101_s15 = smov 0   ;;  %s1103_s16 = smov 0  }
   0x4   :  { %s1105_s17 = smov 0   ;;  %s1107_s18 = smov 0  }
   0x5 LB: > { %s1122_s19 = sadd.s32 4294967295, %s1069_s18   ;;  %s862_s20 = sadd.s32 4294967294, %s1069_s18   ;;  %s1069_s18 = sphi %s1107_s18, %s1398_s18   ;;  %s1065_s17 = sphi %s1105_s17, %s1397_s17   ;;  %s1061_s16 = sphi %s1103_s16, %s1396_s16   ;;  %s1057_s15 = sphi %s1101_s15, %s1395_s15  }
   0x6   : > { %s1126_s21 = sadd.s32 1, %s1069_s18   ;;  %s106_s22 = sadd.s32 1, %s1065_s17 }
   0x7   : > { %s103_s23 = ssub.s32 %s1069_s18, %s1126_s21  ;;  %p116_p0 = scmp.ne.s32.totalorder %s1065_s17, %s1061_s16 }
   0x8   : > { %p104_p1 = scmp.eq.s32.totalorder %s103_s23, 0  ;;  %p117_p2 = scmp.eq.s32.totalorder %s1122_s19, 2 }
   0x9   : > { %p122_p3 = scmp.ne.s32.totalorder %s1061_s16, %s1057_s15  ;;  %p123_p4 = scmp.eq.s32.totalorder %s862_s20, 2 }
   0xa   : > { %s1137_s24 = scalar_select %p104_p1, %s1065_s17, %s106_s22  }
   0xb   : > { %p1139_p5 = por %p117_p2, %p116_p0  ;;  %p1143_p6 = por %p123_p4, %p122_p3 }
   0xc   : > { %p865_p7 = scmp.ge.s32.totalorder %s1069_s18, 1  ;;  %p188_p8 = scmp.lt.s32.totalorder %s1069_s18, 4 }
   0xe   : > { %p189_p9 = pnand %p865_p7, %p188_p8 }
   0xf   : > { %p226_p10 = scmp.lt.s32.totalorder (!%p189_p9), %s1122_s19, 2  ;;  %s871_s13 = sshll.u32 (!%p189_p9), %s1122_s19, 3 }
  0x10   : > { %192 = sbr.rel (%p189_p9) target bundleno = 2109 (0x83d), region = 32  ;;  %s1284_s14 = sand.u32 (!%p189_p9), 1, %s1061_s16  }
  0x11   : > { %s866_s20 = sshll.u32 (!%p189_p9), %s1284_s14, 3  ;;  %s716_s6 = scalar_lea.sflag (!%p189_p9), [#allocation3], %s1284_s14 }
  0x12   : > { %s1300_s22 = scalar_lea.vmem (!%p189_p9), [#allocation2], %s866_s20  ;;  %s1315_s23 = scalar_lea.vmem (!%p189_p9), [#allocation4], %s866_s20 }
  0x15   : > { %s1151_s27 = scalar_select %p226_p10, %s1122_s19, 2  ;;  %v244_v6 = vlaneseq  ;;  %v1071_v13 = vmov 0.0   ;;  %vm266_vm7 = vcmask 72704  }
  0x16   : > { %906 = vmatprep.subr.mxu1 %v1071_v13  ;;  %901 = vmatprep.subr.mxu0 %v1071_v13  ;;  %714 = vst [vmem:[%s1315_s23 + $0x4] sm:$0xf] %v1071_v13 }
  0x17   : > { %s868_s28 = sshll.u32 %s1151_s27, 3  ;;  %v1160_v7 = vand.u32 127, %v244_v6  ;;  %s870_s9 = sshll.u32 %s1151_s27, 1 }
  0x18   : > { %s229_s5 = scalar_lea.vmem %s1388_s0, %s868_s28  ;;  %s233_s8 = scalar_lea.vmem %s1389_s1, %s868_s28 }
  0x19   : > { %v238_v0 = vld [vmem:[%s229_s5] sm:$0xff]  ;;  %vm330_vm0 = vcmp.lt.s32.totalorder %v1160_v7, 16  ;;  %s237_s12 = scalar_lea.vmem %s1390_s2, %s870_s9  ;;  %s891_s27 = sshll.u32 %s1122_s19, 7 }
  0x1a   : > { %251 = vmax.xlane.f32.xlu0 %v238_v0  ;;  %v1210_v23 = vld [vmem:[%s233_s8] sm:$0xff]  ;;  %s734_s28 = sshll.u32 %s1300_s22, 4  ;;  %s732_s5 = scalar_lea.hbm %s1391_s3, %s891_s27  ;;  %s735_s28 = int_to_ptr.vmem [resolvable:$true] %s734_s28 }
  0x1b   : > { %v267_v25 = vsel %vm266_vm7, %v1210_v23, -inf  ;;  %v240_v40 = vld [vmem:[%s237_s12] sm:$0x3]  ;;  %s979_s7 = scalar_lea.vmem %s735_s28, 128  ;;  %s1074_s8 = smov [#allocation2]  }
  0x1c   : > { %v241_v42 = vunpack.c.0.s8 %v240_v40  ;;  %p980_p11 = scmp.ne.s32.totalorder %s735_s28, %s979_s7  ;;  %s983_s9 = sshll.u32 %s1074_s8, 4  ;;  %s984_s9 = int_to_ptr.vmem [resolvable:$false] %s983_s9 }
  0x1d   : > { %s985_s10 = scalar_lea.vmem %s984_s9, 256  ;;  %p986_p0 = scmp.lt.s32.totalorder %s735_s28, %s984_s9 }
  0x1e   : > { %v1243_v44 = vcvt.s32.f32 %v241_v42  ;;  %v246_v42 = vstv %s871_s13  ;;  %p981_p12 = pnand %p980_p11, %p1139_p5  ;;  %p987_p1 = scmp.lt.s32.totalorder %s985_s10, %s979_s7 }
  0x20   : > { %p982_p13 = pneg %p981_p12  ;;  %p988_p2 = por %p987_p1, %p986_p0 }
  0x22   : > { %p989_p3 = pnand %p988_p2, %p982_p13 }
  0xa3   : > { %v252_v1 = vpop.xlane.xlu0 %251 }
  0xa4   : > { %v253_v2 = vsub.f32 %v238_v0, %v252_v1 }
  0xa6   : > { %v254_v3 = vmul.f32 1.442695, %v253_v2 }
  0xa8   : > { %971 = vpow2.f32 %v254_v3 }
  0xb5   : > { %v972_v4 = vpop.eup %971 }
  0xb6   : > { %256 = vadd.xlane.f32.xlu0 %v972_v4 }
 0x13f   : > { %v257_v5 = vpop.xlane.xlu0 %256 }
 0x140   : > { %973 = vlog2.f32 %v257_v5 }
 0x14d   : > { %v974_v8 = vpop.eup %973 }
 0x14e   : > { %v259_v9 = vmul.f32 0.6931472, %v974_v8 }
 0x150   : > { %v1163_v10 = vsub.f32 %v253_v2, %v259_v9 }
 0x152   : > { %v1168_v11 = vsel %vm330_vm0, %v1163_v10, -inf }
 0x153   : > { %vm334_vm1 = vcmp.lt.f32.partialorder %v1168_v11, inf }
 0x154   : > { %v335_v12 = vsel %vm334_vm1, %v1168_v11, -inf }
 0x155   : > { %336 = vmax.xlane.f32.xlu1 %v335_v12 }
 0x1de   : > { %v1174_v14 = vpop.xlane.xlu1 %336 }
 0x1df   : > { %vm348_vm2 = vcmp.lt.f32.partialorder %v1168_v11, %v1174_v14  ;;  %vm338_vm10 = vcmp.ge.f32.partialorder %v335_v12, %v1174_v14 }
 0x1e0   : > { %v1179_v15 = vsel %vm348_vm2, %v1168_v11, -inf  ;;  %v875_v33 = vsel %vm338_vm10, 1.0, %v1071_v13 }
 0x1e1   : > { %350 = vmax.xlane.f32.xlu1 %v1179_v15 }
 0x26a   : > { %v1182_v16 = vpop.xlane.xlu1 %350 }
 0x26b   : > { %vm362_vm3 = vcmp.lt.f32.partialorder %v1168_v11, %v1182_v16  ;;  %vm352_vm1 = vcmp.ge.f32.partialorder %v1179_v15, %v1182_v16 }
 0x26c   : > { %v1187_v17 = vsel %vm362_vm3, %v1168_v11, -inf  ;;  %v876_v51 = vsel %vm352_vm1, 1.0, %v1071_v13 }
 0x26d   : > { %364 = vmax.xlane.f32.xlu0 %v1187_v17 }
 0x2f6   : > { %v1190_v18 = vpop.xlane.xlu0 %364 }
 0x2f7   : > { %vm376_vm4 = vcmp.lt.f32.partialorder %v1168_v11, %v1190_v18  ;;  %vm366_vm2 = vcmp.ge.f32.partialorder %v1187_v17, %v1190_v18 }
 0x2f8   : > { %v377_v19 = vsel %vm376_vm4, %v1168_v11, -inf  ;;  %v877_v55 = vsel %vm366_vm2, 1.0, %v1071_v13 }
 0x2f9   : > { %378 = vmax.xlane.f32.xlu1 %v377_v19 }
 0x382   : > { %v1195_v20 = vpop.xlane.xlu1 %378 }
 0x383   : > { %vm390_vm5 = vcmp.lt.f32.partialorder %v1168_v11, %v1195_v20  ;;  %vm380_vm13 = vcmp.ge.f32.partialorder %v377_v19, %v1195_v20 }
 0x384   : > { %v1200_v21 = vsel %vm390_vm5, %v1168_v11, -inf  ;;  %v878_v41 = vsel %vm380_vm13, 1.0, %v1071_v13 }
 0x385   : > { %392 = vmax.xlane.f32.xlu0 %v1200_v21 }
 0x40e   : > { %v1208_v22 = vpop.xlane.xlu0 %392 }
 0x40f   : > { %vm404_vm6 = vcmp.lt.f32.partialorder %v1168_v11, %v1208_v22  ;;  %vm394_vm3 = vcmp.ge.f32.partialorder %v1200_v21, %v1208_v22 }
 0x410   : > { %v405_v24 = vsel %vm404_vm6, %v1168_v11, -inf  ;;  %v879_v57 = vsel %vm394_vm3, 1.0, %v1071_v13 }
 0x411   : > { %406 = vmax.xlane.f32.xlu1 %v405_v24 }
 0x415   : > { %268 = vmax.xlane.f32.xlu1 %v267_v25 }
 0x49a   : > { %v1217_v26 = vpop.xlane.xlu1 %406 }
 0x49b   : > { %vm418_vm8 = vcmp.lt.f32.partialorder %v1168_v11, %v1217_v26  ;;  %vm408_vm14 = vcmp.ge.f32.partialorder %v405_v24, %v1217_v26 }
 0x49c   : > { %v419_v27 = vsel %vm418_vm8, %v1168_v11, -inf  ;;  %v880_v43 = vsel %vm408_vm14, 1.0, %v1071_v13 }
 0x49d   : > { %420 = vmax.xlane.f32.xlu0 %v419_v27 }
 0x49e   : > { %v1222_v28 = vpop.xlane.xlu1 %268 }
 0x49f   : > { %vm312_vm9 = vcmp.ge.f32.partialorder %v1210_v23, %v1222_v28  ;;  %v270_v46 = vsub.f32 %v1210_v23, %v1222_v28 }
 0x4a0   : > { %v313_v29 = vsel %vm312_vm9, %v1160_v7, 9 }
 0x4a1   : > { %v314_v30 = vsel %vm266_vm7, %v313_v29, 2147483647  ;;  %v271_v50 = vmul.f32 1.442695, %v270_v46 }
 0x4a2   : > { %v316_v31 = vshra.s32 %v314_v30, 16  ;;  %v315_v36 = vand.u32 65535, %v314_v30 }
 0x4a3   : > { %975 = vpow2.f32 %v271_v50 }
 0x4a4   : > { %v318_v32 = vcvt.s32.f32 %v316_v31  ;;  %v317_v37 = vcvt.s32.f32 %v315_v36 }
 0x4a6   : > { %319 = vmin.xlane.f32.xlu1 %v318_v32 }
 0x4aa   : > { %341 = vadd.xlane.f32.xlu1 %v875_v33 }
 0x4b0   : > { %v976_v60 = vpop.eup %975 }
 0x4b1   : > { %v273_v61 = vsel %vm266_vm7, %v976_v60, 0.0 }
 0x526   : > { %v1230_v34 = vpop.xlane.xlu0 %420 }
 0x527   : > { %vm432_vm11 = vcmp.lt.f32.partialorder %v1168_v11, %v1230_v34  ;;  %vm422_vm4 = vcmp.ge.f32.partialorder %v419_v27, %v1230_v34 }
 0x528   : > { %v433_v35 = vsel %vm432_vm11, %v1168_v11, -inf  ;;  %v881_v58 = vsel %vm422_vm4, 1.0, %v1071_v13 }
 0x529   : > { %434 = vmax.xlane.f32.xlu0 %v433_v35 }
 0x52f   : > { %v320_v38 = vpop.xlane.xlu1 %319 }
 0x530   : > { %vm321_vm12 = vcmp.eq.f32.partialorder %v318_v32, %v320_v38  ;;  %v326_v48 = vcvt.f32.s32 %v320_v38 }
 0x531   : > { %v322_v39 = vsel %vm321_vm12, %v317_v37, inf }
 0x532   : > { %323 = vmin.xlane.f32.xlu1 %v322_v39  ;;  %v327_v52 = vshll.u32 %v326_v48, 16  ;;  %v245_v39 = vshrl.u32 %v244_v6, 7 }
 0x533   : > { %v342_v49 = vpop.xlane.xlu1 %341 }
 0x536   : > { %383 = vadd.xlane.f32.xlu1 %v878_v41 }
 0x53a   : > { %411 = vadd.xlane.f32.xlu1 %v880_v43 }
 0x53e   : > { %261 = vadd.xlane.f32.xlu1 %v1243_v44 }
 0x5b2   : > { %v1246_v45 = vpop.xlane.xlu0 %434 }
 0x5b3   : > { %vm446_vm15 = vcmp.lt.f32.partialorder %v1168_v11, %v1246_v45  ;;  %vm436_vm5 = vcmp.ge.f32.partialorder %v433_v35, %v1246_v45 }
 0x5b4   : > { %v447_v47 = vsel %vm446_vm15, %v1168_v11, -inf  ;;  %v882_v59 = vsel %vm436_vm5, 1.0, %v1071_v13 }
 0x5b5   : > { %448 = vmax.xlane.f32.xlu0 %v447_v47 }
 0x5b9   : > { %355 = vadd.xlane.f32.xlu0 %v876_v51 }
 0x5bb   : > { %v324_v53 = vpop.xlane.xlu1 %323 }
 0x5bc   : > { %v325_v54 = vcvt.f32.s32 %v324_v53 }
 0x5bd   : > { %369 = vadd.xlane.f32.xlu0 %v877_v55 }
 0x5be   : > { %v328_v56 = vadd.s32 %v327_v52, %v325_v54 }
 0x5bf   : > { %v384_v62 = vpop.xlane.xlu1 %383 }
 0x5c0   : > { %v329_v30 = vcvt.s32.f32 %v328_v56  ;;  %v301_v56 = vsub.f32 0.0, %v1163_v10 }
 0x5c1   : > { %397 = vadd.xlane.f32.xlu0 %v879_v57 }
 0x5c2   : > { %vm343_vm9 = vcmp.ge.f32.partialorder %v329_v30, 0.0  ;;  %vm345_vm10 = vcmp.lt.f32.partialorder %v329_v30, %v342_v49  ;;  %v302_v57 = vmul.f32 %v301_v56, %v1243_v44 }
 0x5c3   : > { %v412_v63 = vpop.xlane.xlu1 %411  ;;  %vm346_vm13 = vmand %vm343_vm9, %vm345_vm10 }
 0x5c4   : > { %v347_v35 = vsel %vm346_vm13, %v1174_v14, -inf }
 0x5c5   : > { %425 = vadd.xlane.f32.xlu0 %v881_v58  ;;  %v1073_v58 = vmov 1.0  }
 0x5c7   : > { %v262_v0 = vpop.xlane.xlu1 %261 }
 0x5c8   : > { %v873_v1 = vadd.f32 -1.0, %v262_v0 }
 0x5c9   : > { %439 = vadd.xlane.f32.xlu0 %v882_v59 }
 0x5ca   : > { %v264_v2 = vmin.f32 %v873_v1, 8.0 }
 0x5cc   : > { %v916_v3 = vtrunc.f32 %v264_v2 }
 0x5cd   : > { %274 = vadd.xlane.f32.xlu0 %v273_v61 }
 0x5ce   : > { %v917_v4 = vcvt.f32.s32 %v916_v3 }
 0x5d0   : > { %vm281_vm6 = vcmp.eq.s32.totalorder %v1160_v7, %v917_v4 }
 0x5d1   : > { %v874_v5 = vsel %vm281_vm6, 1.0, %v1071_v13 }
 0x5d2   : > { %v284_v9 = vmul.f32 %v874_v5, %v1210_v23 }
 0x5d4   : > { %v285_v15 = vsel %vm266_vm7, %v284_v9, 0.0  ;;  %vm357_vm7 = vcmp.ge.f32.partialorder %v329_v30, %v342_v49 }
 0x63e   : > { %v1269_v8 = vpop.xlane.xlu0 %448 }
 0x63f   : > { %vm450_vm8 = vcmp.ge.f32.partialorder %v447_v47, %v1269_v8 }
 0x640   : > { %v883_v12 = vsel %vm450_vm8, 1.0, %v1071_v13 }
 0x641   : > { %453 = vadd.xlane.f32.xlu1 %v883_v12 }
 0x642   : > { %v356_v17 = vpop.xlane.xlu0 %355 }
 0x643   : > { %v358_v25 = vadd.f32 %v356_v17, %v342_v49 }
 0x645   : > { %286 = vadd.xlane.f32.xlu1 %v285_v15  ;;  %vm359_vm11 = vcmp.lt.f32.partialorder %v329_v30, %v358_v25  ;;  %vm371_vm15 = vcmp.ge.f32.partialorder %v329_v30, %v358_v25 }
 0x646   : > { %v370_v19 = vpop.xlane.xlu0 %369  ;;  %vm360_vm14 = vmand %vm357_vm7, %vm359_vm11 }
 0x647   : > { %v372_v29 = vadd.f32 %v370_v19, %v358_v25  ;;  %v361_v36 = vsel %vm360_vm14, %v1182_v16, %v347_v35 }
 0x649   : > { %v386_v31 = vadd.f32 %v384_v62, %v372_v29  ;;  %vm373_vm12 = vcmp.lt.f32.partialorder %v329_v30, %v372_v29  ;;  %vm385_vm3 = vcmp.ge.f32.partialorder %v329_v30, %v372_v29 }
 0x64a   : > { %v398_v21 = vpop.xlane.xlu0 %397  ;;  %vm374_vm1 = vmand %vm371_vm15, %vm373_vm12 }
 0x64b   : > { %v400_v23 = vadd.f32 %v398_v21, %v386_v31  ;;  %vm387_vm2 = vcmp.lt.f32.partialorder %v329_v30, %v386_v31  ;;  %v375_v37 = vsel %vm374_vm1, %v1190_v18, %v361_v36  ;;  %vm399_vm6 = vcmp.ge.f32.partialorder %v329_v30, %v386_v31 }
 0x64c   : > { %vm388_vm4 = vmand %vm385_vm3, %vm387_vm2  ;;  %v247_v18 = vadd.s32 %v246_v42, %v245_v39 }
 0x64d   : > { %v414_v33 = vadd.f32 %v412_v63, %v400_v23  ;;  %vm401_vm5 = vcmp.lt.f32.partialorder %v329_v30, %v400_v23  ;;  %v389_v40 = vsel %vm388_vm4, %v1195_v20, %v375_v37  ;;  %vm413_vm10 = vcmp.ge.f32.partialorder %v329_v30, %v400_v23 }
 0x64e   : > { %v426_v24 = vpop.xlane.xlu0 %425  ;;  %vm402_vm8 = vmand %vm399_vm6, %vm401_vm5  ;;  %vm248_vm2 = vcmp.lt.s32.totalorder %v247_v18, 20  ;;  %vm290_vm6 = vcmask 7168  }
 0x64f   : > { %v428_v38 = vadd.f32 %v426_v24, %v414_v33  ;;  %vm415_vm9 = vcmp.lt.f32.partialorder %v329_v30, %v414_v33  ;;  %v403_v16 = vsel %vm402_vm8, %v1208_v22, %v389_v40  ;;  %vm427_vm7 = vcmp.ge.f32.partialorder %v329_v30, %v414_v33 }
 0x650   : > { %vm416_vm11 = vmand %vm413_vm10, %vm415_vm9  ;;  %v872_v49 = vsel %vm248_vm2, 1.0, %v1071_v13  ;;  %vm467_vm9 = vcmask 64512  }
 0x651   : > { %vm429_vm12 = vcmp.lt.f32.partialorder %v329_v30, %v428_v38  ;;  %v417_v46 = vsel %vm416_vm11, %v1217_v26, %v403_v16  ;;  %vm441_vm15 = vcmp.ge.f32.partialorder %v329_v30, %v428_v38 }
 0x652   : > { %v440_v27 = vpop.xlane.xlu0 %439  ;;  %vm430_vm14 = vmand %vm427_vm7, %vm429_vm12 }
 0x653   : > { %v442_v41 = vadd.f32 %v440_v27, %v428_v38  ;;  %v431_v47 = vsel %vm430_vm14, %v1230_v34, %v417_v46 }
 0x655   : > { %vm443_vm13 = vcmp.lt.f32.partialorder %v329_v30, %v442_v41  ;;  %vm455_vm3 = vcmp.ge.f32.partialorder %v329_v30, %v442_v41 }
 0x656   : > { %v275_v32 = vpop.xlane.xlu0 %274  ;;  %vm444_vm1 = vmand %vm441_vm15, %vm443_vm13 }
 0x657   : > { %977 = vlog2.f32 %v275_v32  ;;  %v445_v48 = vsel %vm444_vm1, %v1246_v45, %v431_v47 }
 0x664   : > { %v978_v14 = vpop.eup %977 }
 0x665   : > { %v277_v43 = vmul.f32 0.6931472, %v978_v14 }
 0x667   : > { %v278_v22 = vadd.f32 %v277_v43, %v1222_v28 }
 0x6ca   : > { %v454_v6 = vpop.xlane.xlu1 %453 }
 0x6cb   : > { %v456_v20 = vadd.f32 %v454_v6, %v442_v41 }
 0x6cd   : > { %vm457_vm4 = vcmp.lt.f32.partialorder %v329_v30, %v456_v20 }
 0x6ce   : > { %vm458_vm5 = vmand %vm455_vm3, %vm457_vm4  ;;  %v287_v26 = vpop.xlane.xlu1 %286 }
 0x6cf   : > { %v459_v50 = vsel %vm458_vm5, %v1269_v8, %v445_v48  ;;  %v288_v51 = vsub.f32 %v278_v22, %v287_v26 }
 0x6d0   : > { %vm460_vm8 = vcmp.ge.f32.partialorder %v1168_v11, %v459_v50 }
 0x6d1   : > { %v289_v52 = vmul.f32 %v872_v49, %v288_v51  ;;  %v884_v34 = vsel %vm460_vm8, 1.0, %v1071_v13 }
 0x6d2   : > { %v463_v28 = vsel %vm330_vm0, %v884_v34, 0.0  ;;  %vm1072_vm0 = vmmov 0  }
 0x6d3   : > { %v291_v53 = vsel %vm290_vm6, %v289_v52, 0.0  ;;  %v465_v54 = vmul.f32 %v872_v49, %v463_v28  ;;  %v686_v45 = vsub.f32 %v463_v28, %v1243_v44  ;;  %464 = vst [vmem:[%s1300_s22] sm:$0xff] %v463_v28  ;;  %903 = vmatprep.mubr.msk.f32.mxu0 %vm1072_vm0, %v1071_v13  ;;  %908 = vmatprep.mubr.msk.f32.mxu1 %vm1072_vm0, %v1071_v13 }
 0x6d4   : > { %292 = vadd.xlane.f32.xlu1 %v291_v53 }
 0x6d5   : > { %907 = vmatpush3.msra.mxu1 %v465_v54  ;;  %v687_v55 = vand.u32 2147483647, %v686_v45  ;;  %v466_v11 = vmul.f32 %v465_v54, %v1243_v44 }
 0x6d6   : > { %909 = vmatmul.mubr.msk.f32.vlgmr.msra.gmra.mxu1 %vm467_vm9, %v1073_v58 }
 0x6d7   : > { %688 = vadd.xlane.f32.xlu0 %v687_v55  ;;  %902 = vmatpush3.msra.mxu0 %v466_v11 }
 0x6d8   : > { %911 = vmatprep.subr.mxu0 %v1071_v13  ;;  %904 = vmatmul.mubr.msk.f32.vlgmr.msra.gmra.mxu0 %vm467_vm9, %v1073_v58 }
 0x6d9   : > { %912 = vmatpush3.msra.mxu0 %v1243_v44  ;;  %913 = vmatprep.mubr.msk.f32.mxu0 %vm1072_vm0, %v1071_v13 }
 0x6db   : > { %303 = vadd.xlane.f32.xlu0 %v302_v57 }
 0x6dc   : > { %914 = vmatmul.mubr.msk.f32.vlgmr.msra.gmra.mxu0 %vm467_vm9, %v1073_v58 }
 0x75d   : > { %v293_v10 = vpop.xlane.xlu1 %292 }
 0x75e   : > { %v294_v59 = vrot.slane %v293_v10, 4 }
 0x760   : > { %v295_v60 = vadd.f32 %v294_v59, %v293_v10  ;;  %v689_v61 = vpop.xlane.xlu0 %688 }
 0x761   : > { %vm690_vm10 = vcmp.eq.f32.partialorder %v689_v61, 0.0 }
 0x762   : > { %v296_v62 = vrot.slane %v295_v60, 2  ;;  %v888_v63 = vsel %vm690_vm10, 1.0, %v1071_v13 }
 0x763   : > { %v693_v0 = vmul.f32 %v888_v63, %v872_v49 }
 0x764   : > { %v304_v1 = vpop.xlane.xlu0 %303  ;;  %v297_v2 = vadd.f32 %v296_v62, %v295_v60 }
 0x765   : > { %v305_v3 = vrot.slane %v304_v1, 4  ;;  %v694_v4 = vsel %vm290_vm6, %v693_v0, 0.0 }
 0x766   : > { %695 = vadd.xlane.f32.xlu1 %v694_v4  ;;  %v298_v44 = vrot.slane %v297_v2, 1 }
 0x767   : > { %v306_v5 = vadd.f32 %v305_v3, %v304_v1 }
 0x768   : > { %v299_v8 = vadd.f32 %v298_v44, %v297_v2 }
 0x769   : > { %v307_v9 = vrot.slane %v306_v5, 2 }
 0x76a   : > { %918 = vpush %v299_v8 }
 0x76b   : > { %v308_v12 = vadd.f32 %v307_v9, %v306_v5 }
 0x76d   : > { %v309_v15 = vrot.slane %v308_v12, 1 }
 0x76f   : > { %v310_v17 = vadd.f32 %v309_v15, %v308_v12 }
 0x771   : > { %920 = vpush %v310_v17 }
 0x796   : > { %v607_v21 = vpop.f32.mrf.mxu1 }
 0x798   : > { %v537_v19 = vpop.f32.mrf.mxu0  ;;  %v910_v27 = vpop.f32.mrf.mxu1 }
 0x799   : > { %683 = vst [vmem:[%s1315_s23] sm:$0x1] %v537_v19  ;;  %v681_v24 = vsub.f32 %v607_v21, %v537_v19 }
 0x79a   : > { %v905_v25 = vpop.f32.mrf.mxu0 }
 0x79b   : > { %684 = vst [vmem:[%s1315_s23 + $0x1] sm:$0x1] %v681_v24 }
 0x79c   : > { %v677_v29 = vpop.f32.mrf.mxu0 }
 0x79d   : > { %v682_v30 = vsub.f32 %v677_v29, %v537_v19 }
 0x79e   : > { %v915_v31 = vpop.f32.mrf.mxu0 }
 0x79f   : > { %685 = vst [vmem:[%s1315_s23 + $0x2] sm:$0x1] %v682_v30 }
 0x7a0   : > { %992 = shalt.err (!%p989_p3)
}
 0x7a1   : > { %s993_s11 = scalar_lea.hbm %s732_s5, 128  ;;  %s997_s20 = scalar_lea.hbm %s1391_s3, 384 }
 0x7a2   : > { %p994_p4 = scmp.ne.s32.totalorder %s732_s5, %s993_s11  ;;  %p998_p9 = scmp.lt.s32.totalorder %s732_s5, %s1391_s3 }
 0x7a3   : > { %p999_p10 = scmp.lt.s32.totalorder %s997_s20, %s993_s11 }
 0x7a4   : > { %p995_p7 = pnand %p994_p4, %p1139_p5 }
 0x7a5   : > { %p1000_p11 = por %p999_p10, %p998_p9 }
 0x7a6   : > { %p996_p8 = pneg %p995_p7 }
 0x7a8   : > { %p1001_p12 = pnand %p1000_p11, %p996_p8 }
 0x7aa   : > { %1004 = shalt.err (!%p1001_p12)
}
 0x7ab   : > { %924 = dma.vmem_to_hbm [thread:$0]  (%p1139_p5), %s735_s28, 128, %s732_s5, %s716_s6   ;;  %vm704_vm11 = vcmp.eq.s32.totalorder %v1160_v7, 0  ;;  %vm707_vm12 = vcmp.eq.s32.totalorder %v1160_v7, 1  ;;  %vm710_vm13 = vcmp.eq.s32.totalorder %v1160_v7, 2 }
 0x7ac   : > { %s919_s30 = spop %918  ;;  %s747_s28 = sshll.u32 %s1315_s23, 4  ;;  %s748_s28 = int_to_ptr.vmem [resolvable:$true] %s747_s28 }
 0x7ad   : > { %s921_s7 = spop %920  ;;  %v708_v40 = vstv %s919_s30  ;;  %s1351_s9 = scalar_lea.hbm %s1392_s4, %s891_s27 }
 0x7ae   : > { %v705_v38 = vstv %s921_s7  ;;  %s721_s10 = scalar_lea.sflag [#allocation5], %s1284_s14  ;;  %s1005_s11 = scalar_lea.vmem %s748_s28, 128 }
 0x7af   : > { %v706_v39 = vsel %vm704_vm11, %v705_v38, 0.0  ;;  %p1006_p13 = scmp.ne.s32.totalorder %s748_s28, %s1005_s11  ;;  %s1075_s12 = smov [#allocation4]  }
 0x7b0   : > { %v709_v41 = vsel %vm707_vm12, %v708_v40, %v706_v39  ;;  %s1009_s13 = sshll.u32 %s1075_s12, 4  ;;  %s1010_s13 = int_to_ptr.vmem [resolvable:$false] %s1009_s13 }
 0x7b1   : > { %p1007_p0 = pnand %p1006_p13, %p1139_p5  ;;  %s1011_s19 = scalar_lea.vmem %s1010_s13, 256 }
 0x7b2   : > { %p1012_p2 = scmp.lt.s32.totalorder %s748_s28, %s1010_s13  ;;  %p1013_p3 = scmp.lt.s32.totalorder %s1011_s19, %s1005_s11 }
 0x7b3   : > { %p1008_p1 = pneg %p1007_p0 }
 0x7b4   : > { %p1014_p4 = por %p1013_p3, %p1012_p2 }
 0x7b6   : > { %p1015_p7 = pnand %p1014_p4, %p1008_p1 }
 0x7ef   : > { %v696_v13 = vpop.xlane.xlu1 %695 }
 0x7f0   : > { %v697_v32 = vrot.slane %v696_v13, 4 }
 0x7f2   : > { %v698_v23 = vadd.f32 %v697_v32, %v696_v13 }
 0x7f4   : > { %v699_v33 = vrot.slane %v698_v23, 2 }
 0x7f6   : > { %v700_v35 = vadd.f32 %v699_v33, %v698_v23 }
 0x7f8   : > { %v701_v36 = vrot.slane %v700_v35, 1 }
 0x7fa   : > { %v702_v37 = vadd.f32 %v701_v36, %v700_v35 }
 0x7fc   : > { %922 = vpush %v702_v37 }
 0x82d   : > { %s923_s5 = spop %922 }
 0x82e   : > { %v711_v42 = vstv %s923_s5 }
 0x82f   : > { %v712_v14 = vsel %vm710_vm13, %v711_v42, %v709_v41 }
 0x830   : > { %713 = vst [vmem:[%s1315_s23 + $0x3] sm:$0x1] %v712_v14 }
 0x831   : > { %1018 = shalt.err (!%p1015_p7)
}
 0x832   : > { %s1019_s23 = scalar_lea.hbm %s1351_s9, 128  ;;  %s1023_s20 = scalar_lea.hbm %s1392_s4, 384 }
 0x833   : > { %p1020_p8 = scmp.ne.s32.totalorder %s1351_s9, %s1019_s23  ;;  %p1024_p11 = scmp.lt.s32.totalorder %s1351_s9, %s1392_s4 }
 0x834   : > { %p1025_p12 = scmp.lt.s32.totalorder %s1023_s20, %s1019_s23 }
 0x835   : > { %p1021_p9 = pnand %p1020_p8, %p1139_p5 }
 0x836   : > { %p1026_p13 = por %p1025_p12, %p1024_p11 }
 0x837   : > { %p1022_p10 = pneg %p1021_p9 }
 0x839   : > { %p1027_p0 = pnand %p1026_p13, %p1022_p10 }
 0x83b   : > { %1030 = shalt.err (!%p1027_p0)
}
 0x83c   : > { %925 = dma.vmem_to_hbm [thread:$0]  (%p1139_p5), %s748_s28, 128, %s1351_s9, %s721_s10  }
 0x83d PF: > { %p935_p1 = scmp.ge.s32.totalorder %s1069_s18, 2  ;;  %s759_s30 = sand.u32 1, %s1057_s15  }
 0x83e   : > { %s760_s7 = scalar_lea.sflag [#allocation3], %s759_s30 }
 0x83f   : > { %p929_p2 = pnand %p935_p1, %p1143_p6 }
 0x841   : > { %p930_p3 = pneg %p929_p2 }
 0x843   : > { %1048 = dma.done.wait (%p930_p3), %s760_s7, 128  }
 0x844   : > { %1050 = vsyncadd (%p930_p3), %s760_s7, 4294967168  ;;  %s769_s5 = scalar_lea.sflag [#allocation5], %s759_s30 }
 0x845   : > { %1052 = dma.done.wait (%p930_p3), %s769_s5, 128  }
 0x846   : > { %1054 = vsyncadd (%p930_p3), %s769_s5, 4294967168  ;;  %p18_p5 = scmp.ge.s32.totalorder %s1126_s21, 5   ;;  %s1395_s15 = smov %s1061_s16 }
 0x847   : > { %s1396_s16 = smov %s1065_s17  ;;  %s1397_s17 = smov %s1137_s24 }
 0x848   : > { %s1398_s18 = smov %s1126_s21  ;;  %20 = sbr.rel (!%p18_p5) target bundleno = 5 (0x5), region = 90 }
 0x84d   :  { %774 = vsyncpa [#allocation3], 1 }
 0x84e   :  { %776 = vsyncpa [#allocation3 + $0x1], 1 }
 0x84f   :  { %777 = vsyncpa [#allocation5], 1 }
 0x850   :  { %779 = vsyncpa [#allocation5 + $0x1], 1 }

</bundles_post_ra>
